<compile_context>
chip_gen: v5e
topology: v5e:2x2
jax: 0.10.0
libtpu: 0.0.40
codegen_flags: <defaults>
</compile_context>

<pallas_src>
import math
import functools

import jax
import jax.numpy as jnp
from jax import lax
from jax.experimental import pallas as pl
from jax.experimental.pallas import tpu as pltpu


# ---------------------------------------------------------------------------
# In-kernel math helpers (operate on values already loaded from VMEM refs)
# ---------------------------------------------------------------------------

def _layer_norm(x, a2, b2, eps):
    """Torch-style LayerNorm: mean + UNBIASED std over last dim, eps added to std."""
    d = x.shape[-1]
    mean = jnp.mean(x, axis=-1, keepdims=True)
    diff = x - mean
    var = jnp.sum(diff * diff, axis=-1, keepdims=True) / (d - 1)  # Bessel, as torch.std default
    std = jnp.sqrt(var)
    return a2 * diff / (std + eps) + b2


def _mha(q_in, kv_in, mask, wq, bq, wk, bk, wv, bv, wo, bo, n_heads):
    """Multi-head attention on 2-D (seq, d_model) operands; heads statically unrolled."""
    d_model = q_in.shape[-1]
    dk = d_model // n_heads
    inv_sqrt_dk = 1.0 / math.sqrt(dk)

    q = jnp.dot(q_in, wq, preferred_element_type=jnp.float32) + bq
    k = jnp.dot(kv_in, wk, preferred_element_type=jnp.float32) + bk
    v = jnp.dot(kv_in, wv, preferred_element_type=jnp.float32) + bv

    heads = []
    for h in range(n_heads):                       # static unroll; lane slices at 8-aligned offsets
        lo = h * dk
        qh = q[:, lo:lo + dk]
        kh = k[:, lo:lo + dk]
        vh = v[:, lo:lo + dk]
        # (Sq, dk) x (Sk, dk) contracted over dk -> (Sq, Sk); no explicit transpose needed.
        scores = lax.dot_general(qh, kh, (((1,), (1,)), ((), ())),
                                 preferred_element_type=jnp.float32) * inv_sqrt_dk
        scores = jnp.where(mask > 0, scores, jnp.float32(-1e9))
        scores = scores - jnp.max(scores, axis=-1, keepdims=True)
        p = jnp.exp(scores)
        p = p / jnp.sum(p, axis=-1, keepdims=True)
        heads.append(jnp.dot(p, vh, preferred_element_type=jnp.float32))
    concat = jnp.concatenate(heads, axis=-1)       # (Sq, d_model)
    return jnp.dot(concat, wo, preferred_element_type=jnp.float32) + bo


# ---------------------------------------------------------------------------
# Fused sublayer kernels
# ---------------------------------------------------------------------------

def _attn_sublayer_kernel(x_ref, kv_ref, mask_ref, a2_ref, b2_ref,
                          wq_ref, bq_ref, wk_ref, bk_ref, wv_ref, bv_ref,
                          wo_ref, bo_ref, o_ref, *, n_heads, eps, self_attention):
    x = x_ref[0]        # (Sq, D)
    mask = mask_ref[0]  # (Sq, Sk)
    xn = _layer_norm(x, a2_ref[...], b2_ref[...], eps)
    kv_in = xn if self_attention else kv_ref[0]     # self-attn: q=k=v=norm(x); src-attn: k=v=memory
    attn = _mha(xn, kv_in, mask,
                wq_ref[...], bq_ref[...], wk_ref[...], bk_ref[...],
                wv_ref[...], bv_ref[...], wo_ref[...], bo_ref[...], n_heads)
    # TODO(synk): training-mode dropout on the sublayer output / attention weights is
    # omitted (eval() semantics); in-kernel TPU PRNG does not lower on the interpret path.
    o_ref[0] = (x + attn).astype(o_ref.dtype)


def _ffn_sublayer_kernel(x_ref, a2_ref, b2_ref, w1_ref, b1_ref, w2_ref, b2f_ref,
                         o_ref, *, eps):
    x = x_ref[0]        # (S, D)
    xn = _layer_norm(x, a2_ref[...], b2_ref[...], eps)
    h = jnp.maximum(jnp.dot(xn, w1_ref[...], preferred_element_type=jnp.float32) + b1_ref[...], 0.0)
    y = jnp.dot(h, w2_ref[...], preferred_element_type=jnp.float32) + b2f_ref[...]
    o_ref[0] = (x + y).astype(o_ref.dtype)


# ---------------------------------------------------------------------------
# Wrappers (pallas_call plumbing)
# ---------------------------------------------------------------------------

def _const_spec(shape):
    # Full-array block, constant index_map -> DMA'd once, stays resident in VMEM.
    return pl.BlockSpec(shape, lambda b: (0, 0))


def _attn_sublayer(x, kv, mask, ln, attn_p, *, n_heads, eps, self_attention):
    B, Sq, D = x.shape
    Sk = kv.shape[1]
    a2, b2 = ln
    wq, bq, wk, bk, wv, bv, wo, bo = attn_p
    kernel = functools.partial(_attn_sublayer_kernel, n_heads=n_heads, eps=eps,
                               self_attention=self_attention)
    return pl.pallas_call(
        kernel,
        out_shape=jax.ShapeDtypeStruct((B, Sq, D), x.dtype),
        grid=(B,),
        in_specs=[
            pl.BlockSpec((1, Sq, D), lambda b: (b, 0, 0)),    # x (one batch row per grid step)
            pl.BlockSpec((1, Sk, D), lambda b: (b, 0, 0)),    # kv source (x or memory)
            pl.BlockSpec((1, Sq, Sk), lambda b: (b, 0, 0)),   # mask
            _const_spec((1, D)), _const_spec((1, D)),         # LayerNorm a_2, b_2
            _const_spec((D, D)), _const_spec((1, D)),         # Wq, bq
            _const_spec((D, D)), _const_spec((1, D)),         # Wk, bk
            _const_spec((D, D)), _const_spec((1, D)),         # Wv, bv
            _const_spec((D, D)), _const_spec((1, D)),         # Wo, bo
        ],
        out_specs=pl.BlockSpec((1, Sq, D), lambda b: (b, 0, 0)),
        compiler_params=pltpu.CompilerParams(
            dimension_semantics=("parallel",),                # lets v7x shard batch over both TCs
        ),
    )(x, kv, mask, a2, b2, wq, bq, wk, bk, wv, bv, wo, bo)


def _ffn_sublayer(x, ln, ffn_p, *, eps):
    B, S, D = x.shape
    a2, b2 = ln
    w1, b1, w2, b2f = ffn_p
    d_ff = w1.shape[1]
    kernel = functools.partial(_ffn_sublayer_kernel, eps=eps)
    return pl.pallas_call(
        kernel,
        out_shape=jax.ShapeDtypeStruct((B, S, D), x.dtype),
        grid=(B,),
        in_specs=[
            pl.BlockSpec((1, S, D), lambda b: (b, 0, 0)),     # x
            _const_spec((1, D)), _const_spec((1, D)),         # LayerNorm a_2, b_2
            _const_spec((D, d_ff)), _const_spec((1, d_ff)),   # W1, b1
            _const_spec((d_ff, D)), _const_spec((1, D)),      # W2, b2
        ],
        out_specs=pl.BlockSpec((1, S, D), lambda b: (b, 0, 0)),
        compiler_params=pltpu.CompilerParams(
            dimension_semantics=("parallel",),
        ),
    )(x, a2, b2, w1, b1, w2, b2f)


def decoder_layer_forward(x, memory, src_mask, tgt_mask, params, *, n_heads, eps=1e-6):
    """DecoderLayer.forward (eval-mode dropout). x: (B,St,D), memory: (B,Ss,D)."""
    x = _attn_sublayer(x, x, tgt_mask, params["ln0"], params["self_attn"],
                       n_heads=n_heads, eps=eps, self_attention=True)
    x = _attn_sublayer(x, memory, src_mask, params["ln1"], params["src_attn"],
                       n_heads=n_heads, eps=eps, self_attention=False)
    x = _ffn_sublayer(x, params["ln2"], params["ffn"], eps=eps)
    return x


# ---------------------------------------------------------------------------
# Pure-JAX reference (mirrors the torch module math)
# ---------------------------------------------------------------------------

def _layer_norm_ref(x, a2, b2, eps):
    mean = jnp.mean(x, -1, keepdims=True)
    var = jnp.sum((x - mean) ** 2, -1, keepdims=True) / (x.shape[-1] - 1)
    return a2 * (x - mean) / (jnp.sqrt(var) + eps) + b2


def _mha_ref(q_in, kv_in, mask, attn_p, n_heads):
    wq, bq, wk, bk, wv, bv, wo, bo = attn_p
    B, Sq, D = q_in.shape
    Sk = kv_in.shape[1]
    dk = D // n_heads
    q = (q_in @ wq + bq).reshape(B, Sq, n_heads, dk).transpose(0, 2, 1, 3)
    k = (kv_in @ wk + bk).reshape(B, Sk, n_heads, dk).transpose(0, 2, 1, 3)
    v = (kv_in @ wv + bv).reshape(B, Sk, n_heads, dk).transpose(0, 2, 1, 3)
    scores = jnp.einsum("bhqd,bhkd->bhqk", q, k) / math.sqrt(dk)
    scores = jnp.where(mask[:, None, :, :] > 0, scores, -1e9)
    p = jax.nn.softmax(scores, axis=-1)
    out = jnp.einsum("bhqk,bhkd->bhqd", p, v).transpose(0, 2, 1, 3).reshape(B, Sq, D)
    return out @ wo + bo


def decoder_layer_ref(x, memory, src_mask, tgt_mask, params, *, n_heads, eps=1e-6):
    a0, b0 = params["ln0"]
    a1, b1 = params["ln1"]
    a2, b2 = params["ln2"]
    xn = _layer_norm_ref(x, a0, b0, eps)
    x = x + _mha_ref(xn, xn, tgt_mask, params["self_attn"], n_heads)
    xn = _layer_norm_ref(x, a1, b1, eps)
    x = x + _mha_ref(xn, memory, src_mask, params["src_attn"], n_heads)
    xn = _layer_norm_ref(x, a2, b2, eps)
    w1, bb1, w2, bb2 = params["ffn"]
    return x + (jnp.maximum(xn @ w1 + bb1, 0.0) @ w2 + bb2)


# ---------------------------------------------------------------------------
# Demo / self-check
# ---------------------------------------------------------------------------

if __name__ == "__main__":
    B, S_TGT, S_SRC, D, H, D_FF = 2, 8, 8, 32, 4, 128
    EPS = 1e-6

    k_x, k_m, k_ln, k_sa, k_ca, k_ff = jax.random.split(jax.random.PRNGKey(0), 6)
    x = jax.random.normal(k_x, (B, S_TGT, D), jnp.float32)
    memory = jax.random.normal(k_m, (B, S_SRC, D), jnp.float32)

    def dense(k, din, dout, scale=0.2):
        kw, kb = jax.random.split(k)
        w = scale * jax.random.normal(kw, (din, dout), jnp.float32)
        b = scale * jax.random.normal(kb, (1, dout), jnp.float32)
        return w, b

    lnk = jax.random.split(k_ln, 6)

    def ln_params(ka, kb):
        a = 1.0 + 0.1 * jax.random.normal(ka, (1, D), jnp.float32)
        b = 0.1 * jax.random.normal(kb, (1, D), jnp.float32)
        return a, b

    sak = jax.random.split(k_sa, 4)
    cak = jax.random.split(k_ca, 4)
    ffk = jax.random.split(k_ff, 2)

    self_attn_p = sum((dense(k, D, D) for k in sak), ())   # wq,bq,wk,bk,wv,bv,wo,bo
    src_attn_p = sum((dense(k, D, D) for k in cak), ())
    w1, b1 = dense(ffk[0], D, D_FF)
    w2, b2 = dense(ffk[1], D_FF, D)

    params = {
        "ln0": ln_params(lnk[0], lnk[1]),
        "ln1": ln_params(lnk[2], lnk[3]),
        "ln2": ln_params(lnk[4], lnk[5]),
        "self_attn": self_attn_p,
        "src_attn": src_attn_p,
        "ffn": (w1, b1, w2, b2),
    }

    # Causal target mask (1 = attend, 0 = masked), broadcast over batch.
    causal = jnp.tril(jnp.ones((S_TGT, S_TGT), jnp.float32))
    tgt_mask = jnp.broadcast_to(causal, (B, S_TGT, S_TGT))
    # Source mask: batch 0 attends everywhere, batch 1 has its last 2 source positions padded.
    src_valid = jnp.array([[1.0] * S_SRC,
                           [1.0] * (S_SRC - 2) + [0.0] * 2], jnp.float32)
    src_mask = jnp.broadcast_to(src_valid[:, None, :], (B, S_TGT, S_SRC))

    out = decoder_layer_forward(x, memory, src_mask, tgt_mask, params, n_heads=H, eps=EPS)
    out = jax.block_until_ready(out)

    ref = decoder_layer_ref(x, memory, src_mask, tgt_mask, params, n_heads=H, eps=EPS)
    assert out.shape == (B, S_TGT, D) and out.dtype == jnp.float32
    max_err = float(jnp.max(jnp.abs(out - ref)))
    assert jnp.allclose(out, ref, atol=1e-4, rtol=1e-4), f"max abs err = {max_err}"

    print("KERNEL_OK")
</pallas_src>

<mosaic_0001>
module attributes {stable_mosaic.version = 11 : i64} {
  func.func @_attn_sublayer_kernel(%arg0: i32, %arg1: memref<1x8x32xf32, #tpu.memory_space<vmem>>, %arg2: memref<1x8x32xf32, #tpu.memory_space<vmem>>, %arg3: memref<1x8x8xf32, #tpu.memory_space<vmem>>, %arg4: memref<1x32xf32, #tpu.memory_space<vmem>>, %arg5: memref<1x32xf32, #tpu.memory_space<vmem>>, %arg6: memref<32x32xf32, #tpu.memory_space<vmem>>, %arg7: memref<1x32xf32, #tpu.memory_space<vmem>>, %arg8: memref<32x32xf32, #tpu.memory_space<vmem>>, %arg9: memref<1x32xf32, #tpu.memory_space<vmem>>, %arg10: memref<32x32xf32, #tpu.memory_space<vmem>>, %arg11: memref<1x32xf32, #tpu.memory_space<vmem>>, %arg12: memref<32x32xf32, #tpu.memory_space<vmem>>, %arg13: memref<1x32xf32, #tpu.memory_space<vmem>>, %arg14: memref<1x8x32xf32, #tpu.memory_space<vmem>>) attributes {dimension_semantics = [#tpu.dimension_semantics<parallel>], iteration_bounds = array<i64: 2>, scalar_prefetch = 0 : i64, scratch_operands = 0 : i64, tpu.core_type = #tpu.core_type<tc>, window_params = [{transform_indices = @transform_0, window_bounds = array<i64: 1, 8, 32>}, {transform_indices = @transform_1, window_bounds = array<i64: 1, 8, 32>}, {transform_indices = @transform_2, window_bounds = array<i64: 1, 8, 8>}, {pipeline_mode = #tpu.pipeline_mode<synchronous>, transform_indices = @transform_3, window_bounds = array<i64: 1, 32>}, {pipeline_mode = #tpu.pipeline_mode<synchronous>, transform_indices = @transform_4, window_bounds = array<i64: 1, 32>}, {pipeline_mode = #tpu.pipeline_mode<synchronous>, transform_indices = @transform_5, window_bounds = array<i64: 32, 32>}, {pipeline_mode = #tpu.pipeline_mode<synchronous>, transform_indices = @transform_6, window_bounds = array<i64: 1, 32>}, {pipeline_mode = #tpu.pipeline_mode<synchronous>, transform_indices = @transform_7, window_bounds = array<i64: 32, 32>}, {pipeline_mode = #tpu.pipeline_mode<synchronous>, transform_indices = @transform_8, window_bounds = array<i64: 1, 32>}, {pipeline_mode = #tpu.pipeline_mode<synchronous>, transform_indices = @transform_9, window_bounds = array<i64: 32, 32>}, {pipeline_mode = #tpu.pipeline_mode<synchronous>, transform_indices = @transform_10, window_bounds = array<i64: 1, 32>}, {pipeline_mode = #tpu.pipeline_mode<synchronous>, transform_indices = @transform_11, window_bounds = array<i64: 32, 32>}, {pipeline_mode = #tpu.pipeline_mode<synchronous>, transform_indices = @transform_12, window_bounds = array<i64: 1, 32>}, {transform_indices = @transform_13, window_bounds = array<i64: 1, 8, 32>}]} {
    %c0 = arith.constant 0 : index
    %c0_0 = arith.constant 0 : index
    %c0_1 = arith.constant 0 : index
    %0 = vector.load %arg1[%c0, %c0_0, %c0_1] : memref<1x8x32xf32, #tpu.memory_space<vmem>>, vector<1x8x32xf32>
    %1 = vector.shape_cast %0 : vector<1x8x32xf32> to vector<8x32xf32>
    %c0_2 = arith.constant 0 : index
    %c0_3 = arith.constant 0 : index
    %c0_4 = arith.constant 0 : index
    %2 = vector.load %arg3[%c0_2, %c0_3, %c0_4] : memref<1x8x8xf32, #tpu.memory_space<vmem>>, vector<1x8x8xf32>
    %3 = vector.shape_cast %2 : vector<1x8x8xf32> to vector<8x8xf32>
    %c0_5 = arith.constant 0 : index
    %c0_6 = arith.constant 0 : index
    %4 = vector.load %arg4[%c0_5, %c0_6] : memref<1x32xf32, #tpu.memory_space<vmem>>, vector<1x32xf32>
    %c0_7 = arith.constant 0 : index
    %c0_8 = arith.constant 0 : index
    %5 = vector.load %arg5[%c0_7, %c0_8] : memref<1x32xf32, #tpu.memory_space<vmem>>, vector<1x32xf32>
    %cst = arith.constant dense<0.000000e+00> : vector<8xf32>
    %6 = vector.multi_reduction <add>, %1, %cst [1] : vector<8x32xf32> to vector<8xf32>
    %7 = vector.shape_cast %6 : vector<8xf32> to vector<8x1xf32>
    %cst_9 = arith.constant 3.200000e+01 : f32
    %8 = vector.broadcast %cst_9 : f32 to vector<8x1xf32>
    %9 = arith.divf %7, %8 : vector<8x1xf32>
    %10 = vector.broadcast %9 : vector<8x1xf32> to vector<8x32xf32>
    %11 = arith.subf %1, %10 : vector<8x32xf32>
    %12 = arith.mulf %11, %11 : vector<8x32xf32>
    %cst_10 = arith.constant dense<0.000000e+00> : vector<8xf32>
    %13 = vector.multi_reduction <add>, %12, %cst_10 [1] : vector<8x32xf32> to vector<8xf32>
    %14 = vector.shape_cast %13 : vector<8xf32> to vector<8x1xf32>
    %cst_11 = arith.constant 3.100000e+01 : f32
    %15 = vector.broadcast %cst_11 : f32 to vector<8x1xf32>
    %16 = arith.divf %14, %15 : vector<8x1xf32>
    %17 = math.sqrt %16 : vector<8x1xf32>
    %18 = vector.broadcast %4 : vector<1x32xf32> to vector<8x32xf32>
    %19 = arith.mulf %18, %11 : vector<8x32xf32>
    %cst_12 = arith.constant 9.99999997E-7 : f32
    %20 = vector.broadcast %cst_12 : f32 to vector<8x1xf32>
    %21 = arith.addf %17, %20 : vector<8x1xf32>
    %22 = vector.broadcast %21 : vector<8x1xf32> to vector<8x32xf32>
    %23 = arith.divf %19, %22 : vector<8x32xf32>
    %24 = vector.broadcast %5 : vector<1x32xf32> to vector<8x32xf32>
    %25 = arith.addf %23, %24 : vector<8x32xf32>
    %c0_13 = arith.constant 0 : index
    %c0_14 = arith.constant 0 : index
    %26 = vector.load %arg6[%c0_13, %c0_14] : memref<32x32xf32, #tpu.memory_space<vmem>>, vector<32x32xf32>
    %c0_15 = arith.constant 0 : index
    %c0_16 = arith.constant 0 : index
    %27 = vector.load %arg7[%c0_15, %c0_16] : memref<1x32xf32, #tpu.memory_space<vmem>>, vector<1x32xf32>
    %c0_17 = arith.constant 0 : index
    %c0_18 = arith.constant 0 : index
    %28 = vector.load %arg8[%c0_17, %c0_18] : memref<32x32xf32, #tpu.memory_space<vmem>>, vector<32x32xf32>
    %c0_19 = arith.constant 0 : index
    %c0_20 = arith.constant 0 : index
    %29 = vector.load %arg9[%c0_19, %c0_20] : memref<1x32xf32, #tpu.memory_space<vmem>>, vector<1x32xf32>
    %c0_21 = arith.constant 0 : index
    %c0_22 = arith.constant 0 : index
    %30 = vector.load %arg10[%c0_21, %c0_22] : memref<32x32xf32, #tpu.memory_space<vmem>>, vector<32x32xf32>
    %c0_23 = arith.constant 0 : index
    %c0_24 = arith.constant 0 : index
    %31 = vector.load %arg11[%c0_23, %c0_24] : memref<1x32xf32, #tpu.memory_space<vmem>>, vector<1x32xf32>
    %c0_25 = arith.constant 0 : index
    %c0_26 = arith.constant 0 : index
    %32 = vector.load %arg12[%c0_25, %c0_26] : memref<32x32xf32, #tpu.memory_space<vmem>>, vector<32x32xf32>
    %c0_27 = arith.constant 0 : index
    %c0_28 = arith.constant 0 : index
    %33 = vector.load %arg13[%c0_27, %c0_28] : memref<1x32xf32, #tpu.memory_space<vmem>>, vector<1x32xf32>
    %cst_29 = arith.constant dense<0.000000e+00> : vector<8x32xf32>
    %34 = tpu.matmul %25, %26, %cst_29 {dimension_numbers = #tpu.dot_dimension_numbers<[1], [0], [0], [1], [0, 0, 1, 1], [], []>} : vector<8x32xf32>, vector<32x32xf32>, vector<8x32xf32> -> vector<8x32xf32>
    %35 = vector.broadcast %27 : vector<1x32xf32> to vector<8x32xf32>
    %36 = arith.addf %34, %35 : vector<8x32xf32>
    %cst_30 = arith.constant dense<0.000000e+00> : vector<8x32xf32>
    %37 = tpu.matmul %25, %28, %cst_30 {dimension_numbers = #tpu.dot_dimension_numbers<[1], [0], [0], [1], [0, 0, 1, 1], [], []>} : vector<8x32xf32>, vector<32x32xf32>, vector<8x32xf32> -> vector<8x32xf32>
    %38 = vector.broadcast %29 : vector<1x32xf32> to vector<8x32xf32>
    %39 = arith.addf %37, %38 : vector<8x32xf32>
    %cst_31 = arith.constant dense<0.000000e+00> : vector<8x32xf32>
    %40 = tpu.matmul %25, %30, %cst_31 {dimension_numbers = #tpu.dot_dimension_numbers<[1], [0], [0], [1], [0, 0, 1, 1], [], []>} : vector<8x32xf32>, vector<32x32xf32>, vector<8x32xf32> -> vector<8x32xf32>
    %41 = vector.broadcast %31 : vector<1x32xf32> to vector<8x32xf32>
    %42 = arith.addf %40, %41 : vector<8x32xf32>
    %43 = vector.extract_strided_slice %36 {offsets = [0, 0], sizes = [8, 8], strides = [1, 1]} : vector<8x32xf32> to vector<8x8xf32>
    %44 = vector.extract_strided_slice %39 {offsets = [0, 0], sizes = [8, 8], strides = [1, 1]} : vector<8x32xf32> to vector<8x8xf32>
    %45 = vector.extract_strided_slice %42 {offsets = [0, 0], sizes = [8, 8], strides = [1, 1]} : vector<8x32xf32> to vector<8x8xf32>
    %cst_32 = arith.constant dense<0.000000e+00> : vector<8x8xf32>
    %46 = tpu.matmul %43, %44, %cst_32 {dimension_numbers = #tpu.dot_dimension_numbers<[1], [1], [0], [0], [0, 0, 1, 0], [], []>} : vector<8x8xf32>, vector<8x8xf32>, vector<8x8xf32> -> vector<8x8xf32>
    %cst_33 = arith.constant 0.353553385 : f32
    %47 = vector.broadcast %cst_33 : f32 to vector<8x8xf32>
    %48 = arith.mulf %46, %47 : vector<8x8xf32>
    %cst_34 = arith.constant 0.000000e+00 : f32
    %49 = vector.broadcast %cst_34 : f32 to vector<8x8xf32>
    %50 = arith.cmpf ogt, %3, %49 : vector<8x8xf32>
    %cst_35 = arith.constant -1.000000e+09 : f32
    %51 = vector.broadcast %cst_35 : f32 to vector<8x8xf32>
    %52 = arith.select %50, %48, %51 : vector<8x8xi1>, vector<8x8xf32>
    %cst_36 = arith.constant dense<0xFF800000> : vector<8xf32>
    %53 = vector.multi_reduction <maximumf>, %52, %cst_36 [1] : vector<8x8xf32> to vector<8xf32>
    %54 = vector.shape_cast %53 : vector<8xf32> to vector<8x1xf32>
    %55 = vector.broadcast %54 : vector<8x1xf32> to vector<8x8xf32>
    %56 = arith.subf %52, %55 : vector<8x8xf32>
    %57 = math.exp %56 : vector<8x8xf32>
    %cst_37 = arith.constant dense<0.000000e+00> : vector<8xf32>
    %58 = vector.multi_reduction <add>, %57, %cst_37 [1] : vector<8x8xf32> to vector<8xf32>
    %59 = vector.shape_cast %58 : vector<8xf32> to vector<8x1xf32>
    %60 = vector.broadcast %59 : vector<8x1xf32> to vector<8x8xf32>
    %61 = arith.divf %57, %60 : vector<8x8xf32>
    %cst_38 = arith.constant dense<0.000000e+00> : vector<8x8xf32>
    %62 = tpu.matmul %61, %45, %cst_38 {dimension_numbers = #tpu.dot_dimension_numbers<[1], [0], [0], [1], [0, 0, 1, 1], [], []>} : vector<8x8xf32>, vector<8x8xf32>, vector<8x8xf32> -> vector<8x8xf32>
    %63 = vector.extract_strided_slice %36 {offsets = [0, 8], sizes = [8, 8], strides = [1, 1]} : vector<8x32xf32> to vector<8x8xf32>
    %64 = vector.extract_strided_slice %39 {offsets = [0, 8], sizes = [8, 8], strides = [1, 1]} : vector<8x32xf32> to vector<8x8xf32>
    %65 = vector.extract_strided_slice %42 {offsets = [0, 8], sizes = [8, 8], strides = [1, 1]} : vector<8x32xf32> to vector<8x8xf32>
    %cst_39 = arith.constant dense<0.000000e+00> : vector<8x8xf32>
    %66 = tpu.matmul %63, %64, %cst_39 {dimension_numbers = #tpu.dot_dimension_numbers<[1], [1], [0], [0], [0, 0, 1, 0], [], []>} : vector<8x8xf32>, vector<8x8xf32>, vector<8x8xf32> -> vector<8x8xf32>
    %cst_40 = arith.constant 0.353553385 : f32
    %67 = vector.broadcast %cst_40 : f32 to vector<8x8xf32>
    %68 = arith.mulf %66, %67 : vector<8x8xf32>
    %cst_41 = arith.constant 0.000000e+00 : f32
    %69 = vector.broadcast %cst_41 : f32 to vector<8x8xf32>
    %70 = arith.cmpf ogt, %3, %69 : vector<8x8xf32>
    %cst_42 = arith.constant -1.000000e+09 : f32
    %71 = vector.broadcast %cst_42 : f32 to vector<8x8xf32>
    %72 = arith.select %70, %68, %71 : vector<8x8xi1>, vector<8x8xf32>
    %cst_43 = arith.constant dense<0xFF800000> : vector<8xf32>
    %73 = vector.multi_reduction <maximumf>, %72, %cst_43 [1] : vector<8x8xf32> to vector<8xf32>
    %74 = vector.shape_cast %73 : vector<8xf32> to vector<8x1xf32>
    %75 = vector.broadcast %74 : vector<8x1xf32> to vector<8x8xf32>
    %76 = arith.subf %72, %75 : vector<8x8xf32>
    %77 = math.exp %76 : vector<8x8xf32>
    %cst_44 = arith.constant dense<0.000000e+00> : vector<8xf32>
    %78 = vector.multi_reduction <add>, %77, %cst_44 [1] : vector<8x8xf32> to vector<8xf32>
    %79 = vector.shape_cast %78 : vector<8xf32> to vector<8x1xf32>
    %80 = vector.broadcast %79 : vector<8x1xf32> to vector<8x8xf32>
    %81 = arith.divf %77, %80 : vector<8x8xf32>
    %cst_45 = arith.constant dense<0.000000e+00> : vector<8x8xf32>
    %82 = tpu.matmul %81, %65, %cst_45 {dimension_numbers = #tpu.dot_dimension_numbers<[1], [0], [0], [1], [0, 0, 1, 1], [], []>} : vector<8x8xf32>, vector<8x8xf32>, vector<8x8xf32> -> vector<8x8xf32>
    %83 = vector.extract_strided_slice %36 {offsets = [0, 16], sizes = [8, 8], strides = [1, 1]} : vector<8x32xf32> to vector<8x8xf32>
    %84 = vector.extract_strided_slice %39 {offsets = [0, 16], sizes = [8, 8], strides = [1, 1]} : vector<8x32xf32> to vector<8x8xf32>
    %85 = vector.extract_strided_slice %42 {offsets = [0, 16], sizes = [8, 8], strides = [1, 1]} : vector<8x32xf32> to vector<8x8xf32>
    %cst_46 = arith.constant dense<0.000000e+00> : vector<8x8xf32>
    %86 = tpu.matmul %83, %84, %cst_46 {dimension_numbers = #tpu.dot_dimension_numbers<[1], [1], [0], [0], [0, 0, 1, 0], [], []>} : vector<8x8xf32>, vector<8x8xf32>, vector<8x8xf32> -> vector<8x8xf32>
    %cst_47 = arith.constant 0.353553385 : f32
    %87 = vector.broadcast %cst_47 : f32 to vector<8x8xf32>
    %88 = arith.mulf %86, %87 : vector<8x8xf32>
    %cst_48 = arith.constant 0.000000e+00 : f32
    %89 = vector.broadcast %cst_48 : f32 to vector<8x8xf32>
    %90 = arith.cmpf ogt, %3, %89 : vector<8x8xf32>
    %cst_49 = arith.constant -1.000000e+09 : f32
    %91 = vector.broadcast %cst_49 : f32 to vector<8x8xf32>
    %92 = arith.select %90, %88, %91 : vector<8x8xi1>, vector<8x8xf32>
    %cst_50 = arith.constant dense<0xFF800000> : vector<8xf32>
    %93 = vector.multi_reduction <maximumf>, %92, %cst_50 [1] : vector<8x8xf32> to vector<8xf32>
    %94 = vector.shape_cast %93 : vector<8xf32> to vector<8x1xf32>
    %95 = vector.broadcast %94 : vector<8x1xf32> to vector<8x8xf32>
    %96 = arith.subf %92, %95 : vector<8x8xf32>
    %97 = math.exp %96 : vector<8x8xf32>
    %cst_51 = arith.constant dense<0.000000e+00> : vector<8xf32>
    %98 = vector.multi_reduction <add>, %97, %cst_51 [1] : vector<8x8xf32> to vector<8xf32>
    %99 = vector.shape_cast %98 : vector<8xf32> to vector<8x1xf32>
    %100 = vector.broadcast %99 : vector<8x1xf32> to vector<8x8xf32>
    %101 = arith.divf %97, %100 : vector<8x8xf32>
    %cst_52 = arith.constant dense<0.000000e+00> : vector<8x8xf32>
    %102 = tpu.matmul %101, %85, %cst_52 {dimension_numbers = #tpu.dot_dimension_numbers<[1], [0], [0], [1], [0, 0, 1, 1], [], []>} : vector<8x8xf32>, vector<8x8xf32>, vector<8x8xf32> -> vector<8x8xf32>
    %103 = vector.extract_strided_slice %36 {offsets = [0, 24], sizes = [8, 8], strides = [1, 1]} : vector<8x32xf32> to vector<8x8xf32>
    %104 = vector.extract_strided_slice %39 {offsets = [0, 24], sizes = [8, 8], strides = [1, 1]} : vector<8x32xf32> to vector<8x8xf32>
    %105 = vector.extract_strided_slice %42 {offsets = [0, 24], sizes = [8, 8], strides = [1, 1]} : vector<8x32xf32> to vector<8x8xf32>
    %cst_53 = arith.constant dense<0.000000e+00> : vector<8x8xf32>
    %106 = tpu.matmul %103, %104, %cst_53 {dimension_numbers = #tpu.dot_dimension_numbers<[1], [1], [0], [0], [0, 0, 1, 0], [], []>} : vector<8x8xf32>, vector<8x8xf32>, vector<8x8xf32> -> vector<8x8xf32>
    %cst_54 = arith.constant 0.353553385 : f32
    %107 = vector.broadcast %cst_54 : f32 to vector<8x8xf32>
    %108 = arith.mulf %106, %107 : vector<8x8xf32>
    %cst_55 = arith.constant 0.000000e+00 : f32
    %109 = vector.broadcast %cst_55 : f32 to vector<8x8xf32>
    %110 = arith.cmpf ogt, %3, %109 : vector<8x8xf32>
    %cst_56 = arith.constant -1.000000e+09 : f32
    %111 = vector.broadcast %cst_56 : f32 to vector<8x8xf32>
    %112 = arith.select %110, %108, %111 : vector<8x8xi1>, vector<8x8xf32>
    %cst_57 = arith.constant dense<0xFF800000> : vector<8xf32>
    %113 = vector.multi_reduction <maximumf>, %112, %cst_57 [1] : vector<8x8xf32> to vector<8xf32>
    %114 = vector.shape_cast %113 : vector<8xf32> to vector<8x1xf32>
    %115 = vector.broadcast %114 : vector<8x1xf32> to vector<8x8xf32>
    %116 = arith.subf %112, %115 : vector<8x8xf32>
    %117 = math.exp %116 : vector<8x8xf32>
    %cst_58 = arith.constant dense<0.000000e+00> : vector<8xf32>
    %118 = vector.multi_reduction <add>, %117, %cst_58 [1] : vector<8x8xf32> to vector<8xf32>
    %119 = vector.shape_cast %118 : vector<8xf32> to vector<8x1xf32>
    %120 = vector.broadcast %119 : vector<8x1xf32> to vector<8x8xf32>
    %121 = arith.divf %117, %120 : vector<8x8xf32>
    %cst_59 = arith.constant dense<0.000000e+00> : vector<8x8xf32>
    %122 = tpu.matmul %121, %105, %cst_59 {dimension_numbers = #tpu.dot_dimension_numbers<[1], [0], [0], [1], [0, 0, 1, 1], [], []>} : vector<8x8xf32>, vector<8x8xf32>, vector<8x8xf32> -> vector<8x8xf32>
    %123 = tpu.concatenate %62, %82, %102, %122 in 1 : vector<8x8xf32>, vector<8x8xf32>, vector<8x8xf32>, vector<8x8xf32> -> vector<8x32xf32>
    %cst_60 = arith.constant dense<0.000000e+00> : vector<8x32xf32>
    %124 = tpu.matmul %123, %32, %cst_60 {dimension_numbers = #tpu.dot_dimension_numbers<[1], [0], [0], [1], [0, 0, 1, 1], [], []>} : vector<8x32xf32>, vector<32x32xf32>, vector<8x32xf32> -> vector<8x32xf32>
    %125 = vector.broadcast %33 : vector<1x32xf32> to vector<8x32xf32>
    %126 = arith.addf %124, %125 : vector<8x32xf32>
    %127 = arith.addf %1, %126 : vector<8x32xf32>
    %c0_61 = arith.constant 0 : index
    %c0_62 = arith.constant 0 : index
    %c0_63 = arith.constant 0 : index
    %128 = vector.load %arg14[%c0_61, %c0_62, %c0_63] : memref<1x8x32xf32, #tpu.memory_space<vmem>>, vector<1x8x32xf32>
    %129 = vector.shape_cast %128 : vector<1x8x32xf32> to vector<8x32xf32>
    %130 = vector.shape_cast %127 : vector<8x32xf32> to vector<1x8x32xf32>
    tpu.vector_store %arg14[%c0_61, %c0_62, %c0_63], %130 {strides = array<i32>} : memref<1x8x32xf32, #tpu.memory_space<vmem>>, vector<1x8x32xf32>,
    return
  }
  func.func @transform_0(%arg0: i32) -> (i32, i32, i32) {
    %c0_i32 = arith.constant 0 : i32
    %c0_i32_0 = arith.constant 0 : i32
    %c0_i32_1 = arith.constant 0 : i32
    return %arg0, %c0_i32, %c0_i32_0 : i32, i32, i32
  }
  func.func @transform_1(%arg0: i32) -> (i32, i32, i32) {
    %c0_i32 = arith.constant 0 : i32
    %c0_i32_0 = arith.constant 0 : i32
    %c0_i32_1 = arith.constant 0 : i32
    return %arg0, %c0_i32, %c0_i32_0 : i32, i32, i32
  }
  func.func @transform_2(%arg0: i32) -> (i32, i32, i32) {
    %c0_i32 = arith.constant 0 : i32
    %c0_i32_0 = arith.constant 0 : i32
    %c0_i32_1 = arith.constant 0 : i32
    return %arg0, %c0_i32, %c0_i32_0 : i32, i32, i32
  }
  func.func @transform_3(%arg0: i32) -> (i32, i32) {
    %c0_i32 = arith.constant 0 : i32
    %c0_i32_0 = arith.constant 0 : i32
    %c0_i32_1 = arith.constant 0 : i32
    return %c0_i32, %c0_i32_0 : i32, i32
  }
  func.func @transform_4(%arg0: i32) -> (i32, i32) {
    %c0_i32 = arith.constant 0 : i32
    %c0_i32_0 = arith.constant 0 : i32
    %c0_i32_1 = arith.constant 0 : i32
    return %c0_i32, %c0_i32_0 : i32, i32
  }
  func.func @transform_5(%arg0: i32) -> (i32, i32) {
    %c0_i32 = arith.constant 0 : i32
    %c0_i32_0 = arith.constant 0 : i32
    %c0_i32_1 = arith.constant 0 : i32
    return %c0_i32, %c0_i32_0 : i32, i32
  }
  func.func @transform_6(%arg0: i32) -> (i32, i32) {
    %c0_i32 = arith.constant 0 : i32
    %c0_i32_0 = arith.constant 0 : i32
    %c0_i32_1 = arith.constant 0 : i32
    return %c0_i32, %c0_i32_0 : i32, i32
  }
  func.func @transform_7(%arg0: i32) -> (i32, i32) {
    %c0_i32 = arith.constant 0 : i32
    %c0_i32_0 = arith.constant 0 : i32
    %c0_i32_1 = arith.constant 0 : i32
    return %c0_i32, %c0_i32_0 : i32, i32
  }
  func.func @transform_8(%arg0: i32) -> (i32, i32) {
    %c0_i32 = arith.constant 0 : i32
    %c0_i32_0 = arith.constant 0 : i32
    %c0_i32_1 = arith.constant 0 : i32
    return %c0_i32, %c0_i32_0 : i32, i32
  }
  func.func @transform_9(%arg0: i32) -> (i32, i32) {
    %c0_i32 = arith.constant 0 : i32
    %c0_i32_0 = arith.constant 0 : i32
    %c0_i32_1 = arith.constant 0 : i32
    return %c0_i32, %c0_i32_0 : i32, i32
  }
  func.func @transform_10(%arg0: i32) -> (i32, i32) {
    %c0_i32 = arith.constant 0 : i32
    %c0_i32_0 = arith.constant 0 : i32
    %c0_i32_1 = arith.constant 0 : i32
    return %c0_i32, %c0_i32_0 : i32, i32
  }
  func.func @transform_11(%arg0: i32) -> (i32, i32) {
    %c0_i32 = arith.constant 0 : i32
    %c0_i32_0 = arith.constant 0 : i32
    %c0_i32_1 = arith.constant 0 : i32
    return %c0_i32, %c0_i32_0 : i32, i32
  }
  func.func @transform_12(%arg0: i32) -> (i32, i32) {
    %c0_i32 = arith.constant 0 : i32
    %c0_i32_0 = arith.constant 0 : i32
    %c0_i32_1 = arith.constant 0 : i32
    return %c0_i32, %c0_i32_0 : i32, i32
  }
  func.func @transform_13(%arg0: i32) -> (i32, i32, i32) {
    %c0_i32 = arith.constant 0 : i32
    %c0_i32_0 = arith.constant 0 : i32
    %c0_i32_1 = arith.constant 0 : i32
    return %arg0, %c0_i32, %c0_i32_0 : i32, i32, i32
  }
}

</mosaic_0001>

<bundles_post_ra>
// kernel: tpu_custom_call.1
= control target key start
LH: loop header
LB: loop body
LE: loop exit
PB: predicated region body
PF: predicated region fallthrough
CT: control target
= control target key end

     0   :  { %s2156_s0 = inlined_call_operand.hbm [shape: f32[2,8,32], index: 0, kind: input, shape index: {}]   ;;  %s2157_s1 = inlined_call_operand.hbm [shape: f32[2,8,32], index: 1, kind: input, shape index: {}]   ;;  %s2158_s2 = inlined_call_operand.hbm [shape: f32[2,8,8], index: 2, kind: input, shape index: {}]   ;;  %s2159_s3 = inlined_call_operand.vmem [shape: f32[1,32], index: 3, kind: input, shape index: {}]   ;;  %s2160_s4 = inlined_call_operand.vmem [shape: f32[1,32], index: 4, kind: input, shape index: {}]   ;;  %s2161_s5 = inlined_call_operand.hbm [shape: f32[32,32], index: 5, kind: input, shape index: {}]   ;;  %s2162_s6 = inlined_call_operand.vmem [shape: f32[1,32], index: 6, kind: input, shape index: {}]   ;;  %s2163_s7 = inlined_call_operand.hbm [shape: f32[32,32], index: 7, kind: input, shape index: {}]   ;;  %s2164_s8 = inlined_call_operand.vmem [shape: f32[1,32], index: 8, kind: input, shape index: {}]   ;;  %s2165_s9 = inlined_call_operand.hbm [shape: f32[32,32], index: 9, kind: input, shape index: {}]   ;;  %s2166_s10 = inlined_call_operand.vmem [shape: f32[1,32], index: 10, kind: input, shape index: {}]   ;;  %s2167_s11 = inlined_call_operand.hbm [shape: f32[32,32], index: 11, kind: input, shape index: {}]   ;;  %s2168_s12 = inlined_call_operand.vmem [shape: f32[1,32], index: 12, kind: input, shape index: {}]   ;;  %s2169_s13 = inlined_call_operand.hbm [shape: f32[2,8,32], index: 13, kind: output, shape index: {}]  }
   0x1   :  { %2184 = sst [smem:[#allocation26_spill]] %s2157_s1 }
   0x2   :  { %2185 = sst [smem:[#allocation27_spill]] %s2161_s5 }
   0x3   :  { %2186 = sst [smem:[#allocation28_spill]] %s2163_s7 }
   0x4   :  { %2187 = sst [smem:[#allocation29_spill]] %s2165_s9 }
   0x5   :  { %2188 = sst [smem:[#allocation30_spill]] %s2167_s11 }
   0x6   :  { %2189 = sst [smem:[#allocation31_spill]] %s2168_s12 }
   0x7   :  { %2190 = sst [smem:[#allocation32_spill]] %s2169_s13 }
   0x8   :  { %18 = vsyncpa [#allocation3], 0 }
   0x9   :  { %20 = vsyncpa [#allocation3 + $0x1], 0 }
   0xa   :  { %21 = vsyncpa [#allocation6], 0 }
   0xb   :  { %23 = vsyncpa [#allocation6 + $0x1], 0 }
   0xc   :  { %24 = vsyncpa [#allocation9], 0 }
   0xd   :  { %25 = vsyncpa [#allocation12], 0 }
   0xe   :  { %26 = vsyncpa [#allocation4], 0 }
   0xf   :  { %28 = vsyncpa [#allocation4 + $0x1], 0  ;;  %s1838_s25 = smov 0   ;;  %s1840_s26 = smov 0  }
  0x10   :  { %s1842_s27 = smov 0   ;;  %s1844_s28 = smov 0  }
  0x11 LB: > { %2191 = sst [smem:[#allocation20_spill]] %s1740_s25  ;;  %s1862_s15 = sadd.s32 4294967295, %s1752_s28   ;;  %s1752_s28 = sphi %s1844_s28, %s2222_s28   ;;  %s1748_s27 = sphi %s1842_s27, %s2226_s27   ;;  %s1744_s26 = sphi %s1840_s26, %s2225_s26   ;;  %s1740_s25 = sphi %s1838_s25, %s2224_s25  }
  0x12   : > { %2192 = sst [smem:[#allocation21_spill]] %s1752_s28  ;;  %p1287_p0 = scmp.ge.s32.totalorder %s1752_s28, 1 }
  0x13   : > { %s2193_s5 = sld [smem:[#allocation27_spill]]  ;;  %p2183_p1 = scmp.eq.s32.totalorder %s1862_s15, 0 }
  0x14   : > { %p353_p2 = scmp.lt.s32.totalorder %s1752_s28, 3  ;;  %s1754_s17 = smov [#allocation8]  }
  0x15   : > { %s372_s18 = sshll.u32 %s1754_s17, 4  ;;  %s2195_s9 = sld [smem:[#allocation29_spill]]  ;;  %s373_s18 = int_to_ptr.vmem [resolvable:$true] %s372_s18 }
  0x16   : > { %p1867_p3 = pnand %p1287_p0, %p353_p2  ;;  %s1755_s23 = smov [#allocation11]  }
  0x17   : > { %s406_s24 = sshll.u32 %s1755_s23, 4  ;;  %s2170_s29 = smov 128   ;;  %s407_s24 = int_to_ptr.vmem [resolvable:$true] %s406_s24 }
  0x18   : > { %p1351_p4 = pneg %p1867_p3  ;;  %s2172_s30 = smov 8  }
  0x19   : > { %s370_s14 = sshll.u32 %s2193_s5, 4  ;;  %s1286_s17 = sadd.s32 4294967294, %s1752_s28   ;;  %s371_s14 = int_to_ptr.hbm [resolvable:$true] %s370_s14 }
  0x1a   : > { %p1879_p6 = pnand %p1351_p4, %p2183_p1  ;;  %s1895_s19 = sadd.s32 1, %s1752_s28  }
  0x1b   : > { %s404_s21 = sshll.u32 %s2195_s9, 4  ;;  %2197 = sst [smem:[#allocation22_spill]] %s1895_s19  ;;  %s405_s21 = int_to_ptr.hbm [resolvable:$true] %s404_s21 }
  0x1c   : > { %1354 = dma.hbm_to_vmem [thread:$0]  (!%p1879_p6), %s371_s14, 512, %s373_s18, [#allocation9], %s2170_s29, %s2170_s29, %s2172_s30  }
  0x1d   : > { %1360 = dma.hbm_to_vmem [thread:$0]  (!%p1879_p6), %s405_s21, 512, %s407_s24, [#allocation12], %s2170_s29, %s2170_s29, %s2172_s30  }
  0x1e   : > { %s38_s20 = ssub.s32 %s1752_s28, %s1895_s19  ;;  %s41_s23 = sadd.s32 1, %s1748_s27 }
  0x1f   : > { %p39_p7 = scmp.eq.s32.totalorder %s38_s20, 0  ;;  %p48_p8 = scmp.ne.s32.totalorder %s1748_s27, %s1744_s26 }
  0x20   : > { %p49_p9 = scmp.eq.s32.totalorder %s1752_s28, 0  ;;  %p54_p10 = scmp.ne.s32.totalorder %s1744_s26, %s1740_s25 }
  0x21   : > { %s1906_s14 = scalar_select %p39_p7, %s1748_s27, %s41_s23  }
  0x22   : > { %p50_p11 = por %p49_p9, %p48_p8  ;;  %p1910_p12 = por %p2183_p1, %p54_p10 }
  0x23   : > { %2198 = sst [smem:[#allocation23_spill]] %s1906_s14  ;;  %p340_p13 = scmp.eq.s32.totalorder %s1862_s15, 1 }
  0x24   : > { %p346_p0 = scmp.eq.s32.totalorder %s1286_s17, 1  ;;  %p1382_p2 = scmp.lt.s32.totalorder %s1752_s28, 2 }
  0x25   : > { %s2178_s21 = sand.u32 1, %s1748_s27   ;;  %p1917_p4 = por %p340_p13, %p48_p8 }
  0x26   : > { %p1921_p5 = por %p346_p0, %p54_p10  ;;  %s1927_s23 = sshll.u32 %s2178_s21, 3 }
  0x27   : > { %s2200_s24 = scalar_select %p1917_p4, 1, 0 }
  0x28   : > { %s2202_s20 = scalar_select %p1921_p5, 1, 0 }
  0x29   : > { %2201 = sst [smem:[#allocation24_spill]] %s2200_s24  ;;  %s1930_s29 = sshll.u32 %s1752_s28, 3 }
  0x2a   : > { %2203 = sst [smem:[#allocation25_spill]] %s2202_s20  ;;  %p1932_p7 = pnand %p1382_p2, %p50_p11 }
  0x2b   : > { %s459_s17 = sand.u32 1, %s1752_s28   ;;  %s2205_s1 = sld [smem:[#allocation26_spill]] }
  0x2c   : > { %s463_s20 = scalar_lea.vmem [#allocation5], %s1927_s23  ;;  %s1942_s21 = scalar_lea.sflag [#allocation6], %s459_s17 }
  0x2d   : > { %s471_s25 = sshll.u32 %s463_s20, 4  ;;  %p1528_p9 = pneg %p1932_p7  ;;  %s472_s25 = int_to_ptr.vmem [resolvable:$true] %s471_s25 }
  0x31   : > { %s467_s14 = scalar_lea.hbm %s2205_s1, %s1930_s29  ;;  %s1531_s9 = scalar_lea.hbm %s2205_s1, 16 }
  0x32   : > { %s469_s19 = sshll.u32 %s467_s14, 4  ;;  %s470_s19 = int_to_ptr.hbm [resolvable:$true] %s469_s19 }
  0x33   : > { %s1524_s24 = sshra.s32 %s470_s19, 4  ;;  %s1525_s24 = int_to_ptr.hbm [resolvable:$true] %s1524_s24 }
  0x34   : > { %s1526_s13 = scalar_lea.hbm %s1525_s24, 8  ;;  %p1532_p13 = scmp.lt.s32.totalorder %s1525_s24, %s2205_s1 }
  0x35   : > { %p1527_p8 = scmp.ne.s32.totalorder %s1525_s24, %s1526_s13  ;;  %p1533_p0 = scmp.lt.s32.totalorder %s1531_s9, %s1526_s13 }
  0x37   : > { %p1529_p10 = pnand %p1528_p9, %p1527_p8  ;;  %p1534_p2 = por %p1533_p0, %p1532_p13 }
  0x39   : > { %p1530_p11 = pneg %p1529_p10 }
  0x3b   : > { %p1535_p1 = pnand %p1534_p2, %p1530_p11 }
  0x3d   : > { %1538 = shalt.err (!%p1535_p1)
}
  0x3e   : > { %1370 = dma.hbm_to_vmem [thread:$0]  (!%p1932_p7), %s470_s19, 128, %s472_s25, %s1942_s21  }
  0x3f   : > { %s2206_s7 = sld [smem:[#allocation28_spill]]  ;;  %s1758_s5 = smov [#allocation10]  }
  0x40   : > { %s389_s24 = sshll.u32 %s1758_s5, 4  ;;  %s2207_s11 = sld [smem:[#allocation30_spill]]  ;;  %s390_s24 = int_to_ptr.vmem [resolvable:$true] %s389_s24 }
  0x41   : > { %s2208_s20 = smov 8   ;;  %s2209_s1 = smov 128  }
  0x42   : > { %s1759_s25 = smov [#allocation13]   ;;  %s448_s5 = scalar_lea.hbm %s2156_s0, %s1930_s29 }
  0x43   : > { %s423_s19 = sshll.u32 %s1759_s25, 4  ;;  %s444_s13 = scalar_lea.vmem [#allocation2], %s1927_s23  ;;  %s424_s19 = int_to_ptr.vmem [resolvable:$true] %s423_s19 }
  0x44   : > { %s452_s9 = sshll.u32 %s444_s13, 4  ;;  %s453_s9 = int_to_ptr.vmem [resolvable:$true] %s452_s9 }
  0x45   : > { %s387_s28 = sshll.u32 %s2206_s7, 4  ;;  %s450_s7 = sshll.u32 %s448_s5, 4  ;;  %s388_s28 = int_to_ptr.hbm [resolvable:$true] %s387_s28  ;;  %s451_s7 = int_to_ptr.hbm [resolvable:$true] %s450_s7 }
  0x46   : > { %s421_s14 = sshll.u32 %s2207_s11, 4  ;;  %s1614_s11 = sshra.s32 %s451_s7, 4  ;;  %s422_s14 = int_to_ptr.hbm [resolvable:$true] %s421_s14  ;;  %s1615_s11 = int_to_ptr.hbm [resolvable:$true] %s1614_s11 }
  0x47   : > { %1357 = dma.hbm_to_vmem [thread:$0]  (!%p1879_p6), %s388_s28, 512, %s390_s24, [#allocation9], %s2209_s1, %s2209_s1, %s2208_s20  }
  0x48   : > { %1363 = dma.hbm_to_vmem [thread:$0]  (!%p1879_p6), %s422_s14, 512, %s424_s19, [#allocation12], %s2209_s1, %s2209_s1, %s2208_s20  }
  0x49   : > { %s2210_s28 = sand.u32 1, %s1748_s27   ;;  %s1616_s25 = scalar_lea.hbm %s1615_s11, 8 }
  0x4a   : > { %s441_s24 = scalar_lea.sflag [#allocation3], %s2210_s28  ;;  %p1617_p1 = scmp.ne.s32.totalorder %s1615_s11, %s1616_s25 }
  0x4b   : > { %s1621_s14 = scalar_lea.hbm %s2156_s0, 16  ;;  %p1622_p6 = scmp.lt.s32.totalorder %s1615_s11, %s2156_s0 }
  0x4c   : > { %p1619_p8 = pnand %p1617_p1, %p1528_p9  ;;  %p1623_p11 = scmp.lt.s32.totalorder %s1621_s14, %s1616_s25 }
  0x4e   : > { %p1620_p10 = pneg %p1619_p8  ;;  %p1624_p13 = por %p1623_p11, %p1622_p6 }
  0x50   : > { %p1625_p0 = pnand %p1624_p13, %p1620_p10 }
  0x52   : > { %1628 = shalt.err (!%p1625_p0)
}
  0x53   : > { %1367 = dma.hbm_to_vmem [thread:$0]  (!%p1932_p7), %s451_s7, 128, %s453_s9, %s441_s24  }
  0x54   : > { %s486_s5 = scalar_lea.hbm %s2158_s2, %s1930_s29  ;;  %s482_s13 = scalar_lea.vmem [#allocation7], %s1927_s23 }
  0x55   : > { %s490_s28 = sshll.u32 %s482_s13, 4  ;;  %s488_s1 = sshll.u32 %s486_s5, 4  ;;  %s491_s28 = int_to_ptr.vmem [resolvable:$true] %s490_s28  ;;  %s489_s1 = int_to_ptr.hbm [resolvable:$true] %s488_s1 }
  0x56   : > { %s1644_s11 = sshra.s32 %s489_s1, 4  ;;  %s1651_s7 = scalar_lea.hbm %s2158_s2, 16  ;;  %s1645_s11 = int_to_ptr.hbm [resolvable:$true] %s1644_s11 }
  0x57   : > { %s1646_s25 = scalar_lea.hbm %s1645_s11, 8  ;;  %p1652_p10 = scmp.lt.s32.totalorder %s1645_s11, %s2158_s2 }
  0x58   : > { %p1647_p2 = scmp.ne.s32.totalorder %s1645_s11, %s1646_s25  ;;  %p1653_p6 = scmp.lt.s32.totalorder %s1651_s7, %s1646_s25 }
  0x5a   : > { %p1649_p1 = pnand %p1647_p2, %p1528_p9  ;;  %p1654_p11 = por %p1653_p6, %p1652_p10 }
  0x5c   : > { %p1650_p8 = pneg %p1649_p1 }
  0x5e   : > { %p1655_p13 = pnand %p1654_p11, %p1650_p8 }
  0x60   : > { %1658 = shalt.err (!%p1655_p13)
}
  0x61   : > { %1373 = dma.hbm_to_vmem [thread:$0]  (!%p1932_p7), %s489_s1, 128, %s491_s28, %s1942_s21  }
  0x62   : > { %499 = sbr.rel (%p1867_p3) target bundleno = 1440 (0x5a0), region = 72  ;;  %s2012_s29 = sand.u32 (!%p1867_p3), 1, %s1744_s26  }
  0x63   : > { %s2015_s23 = sshll.u32 (!%p1867_p3), %s2012_s29, 3  ;;  %s502_s20 = scalar_lea.sflag (!%p1867_p3), [#allocation3], %s2012_s29 }
  0x64   : > { %s505_s19 = scalar_lea.vmem (!%p1867_p3), [#allocation2], %s2015_s23 }
  0x67   : > { %1719 = dma.done.wait (%p1910_p12), %s502_s20, 128  }
  0x68   : > { %1721 = vsyncadd (%p1910_p12), %s502_s20, 4294967168  ;;  %s511_s16 = sand.u32 1, %s1862_s15  }
  0x69   : > { %s512_s30 = scalar_lea.sflag [#allocation6], %s511_s16 }
  0x6a   : > { %1723 = dma.done.wait (%p1910_p12), %s512_s30, 256  }
  0x6b   : > { %1725 = vsyncadd (%p1910_p12), %s512_s30, 4294967040  ;;  %s525_s21 = scalar_lea.vmem [#allocation7], %s2015_s23  ;;  %p2211_p3 = scmp.eq.s32.totalorder %s1862_s15, 0 }
  0x6d   : > { %1727 = dma.done.wait (%p2211_p3), [#allocation9], 1024   ;;  %p2212_p7 = pmov %p2211_p3 }
  0x6e   : > { %p2213_p9 = pmov %p2211_p3 }
  0x6f   : > { %1729 = vsyncadd (%p2212_p7), [#allocation9], 4294966272 }
  0x70   : > { %1731 = dma.done.wait (%p2213_p9), [#allocation12], 1024   ;;  %p2214_p0 = pmov %p2211_p3 }
  0x71   : > { %vm603_vm0 = vcmask 261120   ;;  %v2037_v0 = vld [vmem:[%s505_s19] sm:$0xff]  ;;  %v1760_v2 = vmov 32.0   ;;  %v1761_v14 = vmov 31.0   ;;  %v665_v25 = vld [vmem:[#allocation8 + $0x8] sm:$0xff]  ;;  %v664_v28 = vld [vmem:[#allocation8] sm:$0xff] }
  0x72   : > { %1733 = vsyncadd (%p2214_p0), [#allocation12], 4294966272  ;;  %v604_v1 = vsel %vm603_vm0, %v2037_v0, 0.0  ;;  %1440 = vrcp.f32 %v1760_v2  ;;  %v667_v18 = vld [vmem:[#allocation8 + $0x18] sm:$0xff]  ;;  %v666_v21 = vld [vmem:[#allocation8 + $0x10] sm:$0xff]  ;;  %vm756_vm9 = vcmask 64512  }
  0x73   : > { %605 = vadd.xlane.f32.xlu0 %v604_v1  ;;  %1442 = vrcp.f32 %v1761_v14  ;;  %v672_v19 = vld [vmem:[#allocation10 + $0x18] sm:$0xff]  ;;  %702 = vmatpush.msra.mxu0 %v667_v18  ;;  %v671_v22 = vld [vmem:[#allocation10 + $0x10] sm:$0xff]  ;;  %v670_v26 = vld [vmem:[#allocation10 + $0x8] sm:$0xff]  ;;  %s1762_s25 = smov 104   ;;  %s1763_s22 = smov 120  }
  0x74   : > { %v677_v20 = vld [vmem:[#allocation11 + $0x18] sm:$0xff]  ;;  %725 = vmatpush.msra.mxu1 %v672_v19  ;;  %v676_v23 = vld [vmem:[#allocation11 + $0x10] sm:$0xff]  ;;  %v675_v27 = vld [vmem:[#allocation11 + $0x8] sm:$0xff]  ;;  %s1764_s14 = smov 112   ;;  %s1765_s24 = smov 8  }
  0x75   : > { %748 = vmatpush.msra.mxu2 %v677_v20  ;;  %703 = vmatpush.msra.mxu0 %v666_v21  ;;  %v669_v29 = vld [vmem:[#allocation10] sm:$0xff]  ;;  %v1434_v50 = vld [vmem:[%s2159_s3] ss:$0 sm:$0xff]  ;;  %s1766_s20 = smov 16   ;;  %s1767_s19 = smov 24  }
  0x76   : > { %726 = vmatpush.msra.mxu1 %v671_v22  ;;  %v674_v30 = vld [vmem:[#allocation11] sm:$0xff]  ;;  %v1435_v57 = vld [vmem:[%s2160_s4] ss:$0 sm:$0xff]  ;;  %s1324_s16 = sshll.u32 %s1862_s15, 3  ;;  %s2215_s18 = sld [smem:[#allocation31_spill]] }
  0x77   : > { %749 = vmatpush.msra.mxu2 %v676_v23  ;;  %704 = vmatpush.msra.mxu0 %v665_v25  ;;  %v1437_v61 = vld [vmem:[%s2164_s8] ss:$0 sm:$0xff]  ;;  %s2216_s5 = sld [smem:[#allocation32_spill]]  ;;  %s598_s1 = scalar_lea.vmem [#allocation14], %s2015_s23 }
  0x78   : > { %v1441_v3 = vpop.eup %1440  ;;  %727 = vmatpush.msra.mxu1 %v670_v26  ;;  %v1436_v63 = vld [vmem:[%s2162_s6] ss:$0 sm:$0xff]  ;;  %s1132_s11 = sshll.u32 %s598_s1, 4  ;;  %s1120_s15 = scalar_lea.sflag [#allocation4], %s2012_s29  ;;  %s1133_s11 = int_to_ptr.vmem [resolvable:$true] %s1132_s11 }
  0x79   : > { %v608_v4 = vmul.f32 32.0, %v1441_v3  ;;  %vm612_vm1 = vweird.f32 %v1441_v3  ;;  %v1443_v15 = vpop.eup %1442  ;;  %750 = vmatpush.msra.mxu2 %v675_v27  ;;  %705 = vmatpush.msra.mxu0 %v664_v28 }
  0x7a   : > { %v621_v16 = vmul.f32 31.0, %v1443_v15  ;;  %vm625_vm2 = vweird.f32 %v1443_v15  ;;  %728 = vmatpush.msra.mxu1 %v669_v29 }
  0x7b   : > { %v609_v5 = vsub.f32 1.0, %v608_v4  ;;  %751 = vmatpush.msra.mxu2 %v674_v30 }
  0x7c   : > { %v622_v17 = vsub.f32 1.0, %v621_v16 }
  0x7d   : > { %v610_v6 = vmul.f32 %v1441_v3, %v609_v5  ;;  %s1130_s28 = scalar_lea.hbm %s2216_s5, %s1324_s16  ;;  %s1694_s23 = scalar_lea.hbm %s2216_s5, 16 }
  0x7e   : > { %v623_v24 = vmul.f32 %v1443_v15, %v622_v17 }
  0x7f   : > { %v611_v7 = vadd.f32 %v1441_v3, %v610_v6 }
  0x80   : > { %v624_v31 = vadd.f32 %v1443_v15, %v623_v24 }
  0x81   : > { %v613_v8 = vsel %vm612_vm1, %v1441_v3, %v611_v7  ;;  %v1438_v3 = vld [vmem:[%s2166_s10] ss:$0 sm:$0xff] }
  0x82   : > { %v626_v32 = vsel %vm625_vm2, %v1443_v15, %v624_v31 }
  0xe6   : > { %v606_v9 = vpop.xlane.xlu0 %605 }
  0xe7   : > { %v614_v10 = vmul.f32 %v613_v8, %v606_v9 }
  0xe9   : > { %v2042_v11 = vsub.f32 %v2037_v0, %v614_v10 }
  0xeb   : > { %v616_v12 = vmul.f32 %v2042_v11, %v2042_v11  ;;  %v643_v55 = vmul.f32 %v1434_v50, %v2042_v11 }
  0xed   : > { %v617_v13 = vsel %vm603_vm0, %v616_v12, 0.0 }
  0xee   : > { %618 = vadd.xlane.f32.xlu0 %v617_v13  ;;  %v600_v13 = vld [vmem:[%s525_s21] sm:$0xff] }
  0xef   : > { %vm784_vm10 = vcmp.gt.f32.partialorder %v600_v13, 0.0 }
 0x161   : > { %v619_v33 = vpop.xlane.xlu0 %618 }
 0x162   : > { %v627_v34 = vmul.f32 %v626_v32, %v619_v33 }
 0x164   : > { %1444 = vrsqrt.f32 %v627_v34  ;;  %vm635_vm3 = vcmp.eq.f32.partialorder %v627_v34, inf  ;;  %v638_v42 = vand.u32 2147483648, %v627_v34  ;;  %vm637_vm4 = vcmp.eq.f32.partialorder %v627_v34, 0.0 }
 0x16a   : > { %v1445_v35 = vpop.eup %1444 }
 0x16b   : > { %v629_v36 = vmul.f32 %v1445_v35, %v627_v34 }
 0x16d   : > { %v630_v37 = vmul.f32 %v1445_v35, %v629_v36 }
 0x16f   : > { %v631_v38 = vmul.f32 0.5, %v630_v37 }
 0x171   : > { %v632_v39 = vsub.f32 1.5, %v631_v38 }
 0x173   : > { %v633_v40 = vmul.f32 %v1445_v35, %v632_v39 }
 0x175   : > { %v634_v41 = vmul.f32 %v633_v40, %v627_v34 }
 0x177   : > { %v636_v43 = vsel %vm635_vm3, %v627_v34, %v634_v41 }
 0x178   : > { %v639_v44 = vsel %vm637_vm4, %v638_v42, %v636_v43 }
 0x179   : > { %v644_v45 = vadd.f32 1e-06, %v639_v44 }
 0x17b   : > { %1446 = vrcp.f32 %v644_v45  ;;  %v656_v49 = vand.u32 2147483648, %v644_v45  ;;  %v654_v52 = vand.u32 2147483647, %v644_v45  ;;  %vm650_vm6 = vweird.f32 %v644_v45 }
 0x17d   : > { %v657_v54 = vor.u32 1.1754944e-38, %v656_v49  ;;  %vm655_vm8 = vcmp.eq.f32.partialorder %v654_v52, 8.507059e+37 }
 0x181   : > { %v1447_v46 = vpop.eup %1446 }
 0x182   : > { %v646_v47 = vmul.f32 %v1447_v46, %v644_v45  ;;  %vm651_vm5 = vweird.f32 %v1447_v46 }
 0x183   : > { %vm652_vm7 = vmor %vm650_vm6, %vm651_vm5 }
 0x184   : > { %v647_v48 = vsub.f32 1.0, %v646_v47 }
 0x186   : > { %v648_v51 = vmul.f32 %v1447_v46, %v647_v48 }
 0x188   : > { %v649_v53 = vadd.f32 %v1447_v46, %v648_v51 }
 0x18a   : > { %v653_v56 = vsel %vm652_vm7, %v1447_v46, %v649_v53 }
 0x18b   : > { %v658_v58 = vsel %vm655_vm8, %v657_v54, %v653_v56 }
 0x18c   : > { %v659_v59 = vmul.f32 %v658_v58, %v643_v55 }
 0x18e   : > { %v663_v60 = vadd.f32 %v1435_v57, %v659_v59 }
 0x190   : > { %1307 = vmatmul.msk.f32.vlgmr.msra.gmra.mxu0 %vm603_vm0, %v663_v60  ;;  %1308 = vmatmul.msk.f32.vlgmr.msra.gmra.mxu1 %vm603_vm0, %v663_v60 }
 0x191   : > { %1309 = vmatmul.msk.f32.vlgmr.msra.gmra.mxu2 %vm603_vm0, %v663_v60 }
 0x20d   : > { %v730_v62 = vpop.f32.mrf.mxu1  ;;  %v707_v2 = vpop.f32.mrf.mxu0 }
 0x20e   : > { %v731_v1 = vadd.f32 %v1437_v61, %v730_v62  ;;  %v708_v4 = vadd.f32 %v1436_v63, %v707_v2 }
 0x210   : > { %996 = vrot.lane.b32.xlu0 %v731_v1, %s1762_s25  ;;  %835 = vrot.lane.b32.xlu2 %v731_v1, %s1763_s22 }
 0x211   : > { %916 = vrot.lane.b32.xlu1 %v731_v1, %s1764_s14  ;;  %1310 = vmatpush.xpose.msk.msra.mxu3 %vm756_vm9, %v731_v1 }
 0x214   : > { %v753_v5 = vpop.f32.mrf.mxu2  ;;  %1311 = vmatmul.msk.f32.vlgmr.msra.gmra.mxu3 %vm756_vm9, %v708_v4 }
 0x215   : > { %v2071_v6 = vadd.f32 %v1438_v3, %v753_v5 }
 0x217   : > { %828 = vmatpush.msrb.mxu3 %v2071_v6 }
 0x218   : > { %833 = vrot.lane.b32.xlu2 %v708_v4, %s1763_s22 }
 0x219   : > { %914 = vrot.lane.b32.xlu1 %v708_v4, %s1764_s14 }
 0x221   : > { %994 = vrot.lane.b32.xlu1 %v708_v4, %s1762_s25 }
 0x26a   : > { %v836_v7 = vpop.permute.xlu2 %835 }
 0x26b   : > { %1313 = vmatpush.xpose.msk.msrb.mxu0 %vm756_vm9, %v836_v7 }
 0x272   : > { %v834_v8 = vpop.permute.xlu2 %833 }
 0x273   : > { %1314 = vmatmul.msk.f32.vlgmr.msrb.gmra.mxu0 %vm756_vm9, %v834_v8 }
 0x282   : > { %v997_v9 = vpop.permute.xlu0 %996 }
 0x283   : > { %v917_v10 = vpop.permute.xlu1 %916  ;;  %1319 = vmatpush.xpose.msk.msra.mxu0 %vm756_vm9, %v997_v9 }
 0x284   : > { %1316 = vmatpush.xpose.msk.msrb.mxu2 %vm756_vm9, %v917_v10 }
 0x28b   : > { %v915_v11 = vpop.permute.xlu1 %914 }
 0x28c   : > { %1317 = vmatmul.msk.f32.vlgmr.msrb.gmra.mxu2 %vm756_vm9, %v915_v11 }
 0x293   : > { %v995_v12 = vpop.permute.xlu1 %994 }
 0x294   : > { %1320 = vmatmul.msk.f32.vlgmr.msra.gmra.mxu0 %vm756_vm9, %v995_v12 }
 0x297   : > { %v780_v14 = vpop.f32.mrf.mxu3 }
 0x298   : > { %v783_v15 = vmul.f32 0.35355338, %v780_v14 }
 0x29a   : > { %v785_v16 = vsel %vm784_vm10, %v783_v15, -1e+09 }
 0x29b   : > { %v786_v17 = vsel %vm756_vm9, %v785_v16, -inf }
 0x29c   : > { %787 = vmax.xlane.f32.xlu2 %v786_v17 }
 0x2f0   : > { %v858_v18 = vpop.f32.mrf.mxu0 }
 0x2f1   : > { %v861_v19 = vmul.f32 0.35355338, %v858_v18 }
 0x2f3   : > { %v862_v20 = vsel %vm784_vm10, %v861_v19, -1e+09 }
 0x2f4   : > { %v863_v21 = vsel %vm756_vm9, %v862_v20, -inf }
 0x2f5   : > { %864 = vmax.xlane.f32.xlu1 %v863_v21 }
 0x30f   : > { %v939_v22 = vpop.f32.mrf.mxu2  ;;  %v788_v23 = vpop.xlane.xlu2 %787 }
 0x310   : > { %v942_v24 = vmul.f32 0.35355338, %v939_v22  ;;  %v789_v25 = vsub.f32 %v785_v16, %v788_v23 }
 0x311   : > { %v1019_v26 = vpop.f32.mrf.mxu0 }
 0x312   : > { %v790_v27 = vmul.f32 1.442695, %v789_v25  ;;  %v1022_v28 = vmul.f32 0.35355338, %v1019_v26  ;;  %v943_v29 = vsel %vm784_vm10, %v942_v24, -1e+09 }
 0x313   : > { %v944_v30 = vsel %vm756_vm9, %v943_v29, -inf }
 0x314   : > { %1448 = vpow2.f32 %v790_v27  ;;  %945 = vmax.xlane.f32.xlu0 %v944_v30  ;;  %v1023_v31 = vsel %vm784_vm10, %v1022_v28, -1e+09 }
 0x315   : > { %v1024_v32 = vsel %vm756_vm9, %v1023_v31, -inf }
 0x316   : > { %1025 = vmax.xlane.f32.xlu2 %v1024_v32 }
 0x31a   : > { %v1449_v33 = vpop.eup %1448 }
 0x31b   : > { %v792_v34 = vsel %vm756_vm9, %v1449_v33, 0.0 }
 0x31e   : > { %793 = vadd.xlane.f32.xlu2 %v792_v34 }
 0x328   : > { %888 = vrot.lane.b32.xlu0 %v2071_v6, %s1763_s22 }
 0x368   : > { %v865_v35 = vpop.xlane.xlu1 %864 }
 0x369   : > { %v866_v36 = vsub.f32 %v862_v20, %v865_v35 }
 0x36b   : > { %v867_v37 = vmul.f32 1.442695, %v866_v36 }
 0x36d   : > { %1450 = vpow2.f32 %v867_v37 }
 0x373   : > { %v1451_v38 = vpop.eup %1450 }
 0x374   : > { %v869_v39 = vsel %vm756_vm9, %v1451_v38, 0.0 }
 0x375   : > { %870 = vadd.xlane.f32.xlu1 %v869_v39 }
 0x387   : > { %v946_v40 = vpop.xlane.xlu0 %945 }
 0x388   : > { %v947_v41 = vsub.f32 %v943_v29, %v946_v40 }
 0x389   : > { %v1026_v42 = vpop.xlane.xlu2 %1025 }
 0x38a   : > { %v948_v43 = vmul.f32 1.442695, %v947_v41  ;;  %v1027_v44 = vsub.f32 %v1023_v31, %v1026_v42  ;;  %v682_v42 = vld [vmem:[#allocation13 + $0x18] sm:$0xff] }
 0x38b   : > { %1109 = vmatpush.msra.mxu2 %v682_v42 }
 0x38c   : > { %1452 = vpow2.f32 %v948_v43  ;;  %v1028_v45 = vmul.f32 1.442695, %v1027_v44  ;;  %v681_v43 = vld [vmem:[#allocation13 + $0x10] sm:$0xff]  ;;  %v680_v44 = vld [vmem:[#allocation13 + $0x8] sm:$0xff] }
 0x38d   : > { %1110 = vmatpush.msra.mxu2 %v681_v43 }
 0x38e   : > { %1454 = vpow2.f32 %v1028_v45  ;;  %v679_v45 = vld [vmem:[#allocation13] sm:$0xff] }
 0x38f   : > { %1111 = vmatpush.msra.mxu2 %v680_v44 }
 0x391   : > { %v794_v46 = vpop.xlane.xlu2 %793  ;;  %1112 = vmatpush.msra.mxu2 %v679_v45 }
 0x392   : > { %v2097_v47 = vpop.eup %1452  ;;  %1456 = vrcp.f32 %v794_v46  ;;  %v806_v55 = vand.u32 2147483648, %v794_v46  ;;  %v804_v57 = vand.u32 2147483647, %v794_v46  ;;  %vm800_vm12 = vweird.f32 %v794_v46 }
 0x393   : > { %v950_v48 = vsel %vm756_vm9, %v2097_v47, 0.0 }
 0x394   : > { %v2101_v49 = vpop.eup %1454  ;;  %951 = vadd.xlane.f32.xlu2 %v950_v48  ;;  %v807_v59 = vor.u32 1.1754944e-38, %v806_v55  ;;  %vm805_vm14 = vcmp.eq.f32.partialorder %v804_v57, 8.507059e+37 }
 0x395   : > { %v1030_v50 = vsel %vm756_vm9, %v2101_v49, 0.0 }
 0x396   : > { %1031 = vadd.xlane.f32.xlu1 %v1030_v50 }
 0x398   : > { %v1457_v51 = vpop.eup %1456 }
 0x399   : > { %v796_v52 = vmul.f32 %v1457_v51, %v794_v46  ;;  %vm801_vm11 = vweird.f32 %v1457_v51 }
 0x39a   : > { %v889_v53 = vpop.permute.xlu0 %888  ;;  %vm802_vm13 = vmor %vm800_vm12, %vm801_vm11 }
 0x39b   : > { %v797_v54 = vsub.f32 1.0, %v796_v52  ;;  %909 = vmatpush.msrb.mxu1 %v889_v53  ;;  %v1439_v52 = vld [vmem:[%s2215_s18] ss:$0 sm:$0xff] }
 0x39d   : > { %v798_v56 = vmul.f32 %v1457_v51, %v797_v54 }
 0x39f   : > { %v799_v58 = vadd.f32 %v1457_v51, %v798_v56 }
 0x3a1   : > { %v803_v60 = vsel %vm802_vm13, %v1457_v51, %v799_v58  ;;  %vm1087_vm13 = vcmask 130048  }
 0x3a2   : > { %v808_v61 = vsel %vm805_vm14, %v807_v59, %v803_v60  ;;  %vm1089_vm14 = vcmask 195584  }
 0x3a3   : > { %v809_v62 = vmul.f32 %v1449_v33, %v808_v61 }
 0x3a5   : > { %1312 = vmatmul.msk.f32.vlgmr.msrb.gmra.mxu3 %vm756_vm9, %v809_v62 }
 0x3ac   : > { %968 = vrot.lane.b32.xlu2 %v2071_v6, %s1764_s14 }
 0x3af   : > { %1048 = vrot.lane.b32.xlu1 %v2071_v6, %s1762_s25  ;;  %s1134_s25 = sshll.u32 %s1130_s28, 4  ;;  %s1135_s25 = int_to_ptr.hbm [resolvable:$true] %s1134_s25 }
 0x3b0   : > { %s1688_s22 = sshra.s32 %s1135_s25, 4  ;;  %s1689_s22 = int_to_ptr.hbm [resolvable:$true] %s1688_s22 }
 0x3b1   : > { %s1690_s14 = scalar_lea.hbm %s1689_s22, 8  ;;  %p1695_p8 = scmp.lt.s32.totalorder %s1689_s22, %s2216_s5 }
 0x3b2   : > { %p1691_p12 = scmp.ne.s32.totalorder %s1689_s22, %s1690_s14  ;;  %p1696_p10 = scmp.lt.s32.totalorder %s1694_s23, %s1690_s14 }
 0x3b4   : > { %p1692_p2 = pnand %p1691_p12, %p1917_p4  ;;  %p1697_p6 = por %p1696_p10, %p1695_p8 }
 0x3b6   : > { %p1693_p1 = pneg %p1692_p2 }
 0x3b8   : > { %p1698_p11 = pnand %p1697_p6, %p1693_p1 }
 0x3e8   : > { %v871_v63 = vpop.xlane.xlu1 %870 }
 0x3e9   : > { %1458 = vrcp.f32 %v871_v63  ;;  %v883_v4 = vand.u32 2147483648, %v871_v63  ;;  %v881_v7 = vand.u32 2147483647, %v871_v63  ;;  %vm877_vm1 = vweird.f32 %v871_v63 }
 0x3eb   : > { %v884_v9 = vor.u32 1.1754944e-38, %v883_v4  ;;  %vm882_vm3 = vcmp.eq.f32.partialorder %v881_v7, 8.507059e+37 }
 0x3ef   : > { %v1459_v1 = vpop.eup %1458 }
 0x3f0   : > { %v873_v2 = vmul.f32 %v1459_v1, %v871_v63  ;;  %vm878_vm15 = vweird.f32 %v1459_v1 }
 0x3f1   : > { %vm879_vm2 = vmor %vm877_vm1, %vm878_vm15 }
 0x3f2   : > { %v874_v3 = vsub.f32 1.0, %v873_v2 }
 0x3f4   : > { %v875_v5 = vmul.f32 %v1459_v1, %v874_v3 }
 0x3f6   : > { %v876_v8 = vadd.f32 %v1459_v1, %v875_v5 }
 0x3f8   : > { %v880_v10 = vsel %vm879_vm2, %v1459_v1, %v876_v8 }
 0x3f9   : > { %v885_v11 = vsel %vm882_vm3, %v884_v9, %v880_v10 }
 0x3fa   : > { %v886_v12 = vmul.f32 %v1451_v38, %v885_v11 }
 0x3fc   : > { %1315 = vmatmul.msk.f32.vlgmr.msrb.gmra.mxu1 %vm756_vm9, %v886_v12 }
 0x407   : > { %v952_v6 = vpop.xlane.xlu2 %951 }
 0x408   : > { %1460 = vrcp.f32 %v952_v6  ;;  %v964_v20 = vand.u32 2147483648, %v952_v6  ;;  %v962_v22 = vand.u32 2147483647, %v952_v6  ;;  %vm958_vm5 = vweird.f32 %v952_v6 }
 0x409   : > { %v1032_v13 = vpop.xlane.xlu1 %1031 }
 0x40a   : > { %1462 = vrcp.f32 %v1032_v13  ;;  %v965_v26 = vor.u32 1.1754944e-38, %v964_v20  ;;  %vm963_vm7 = vcmp.eq.f32.partialorder %v962_v22, 8.507059e+37  ;;  %v1044_v30 = vand.u32 2147483648, %v1032_v13 }
 0x40b   : > { %vm1038_vm10 = vweird.f32 %v1032_v13  ;;  %v1042_v31 = vand.u32 2147483647, %v1032_v13 }
 0x40c   : > { %v1045_v34 = vor.u32 1.1754944e-38, %v1044_v30 }
 0x40d   : > { %vm1043_vm12 = vcmp.eq.f32.partialorder %v1042_v31, 8.507059e+37 }
 0x40e   : > { %v1461_v14 = vpop.eup %1460 }
 0x40f   : > { %v954_v15 = vmul.f32 %v1461_v14, %v952_v6  ;;  %v969_v16 = vpop.permute.xlu2 %968  ;;  %vm959_vm4 = vweird.f32 %v1461_v14 }
 0x410   : > { %v1463_v17 = vpop.eup %1462  ;;  %989 = vmatpush.msra.mxu3 %v969_v16  ;;  %vm960_vm6 = vmor %vm958_vm5, %vm959_vm4 }
 0x411   : > { %v955_v18 = vsub.f32 1.0, %v954_v15  ;;  %v1034_v19 = vmul.f32 %v1463_v17, %v1032_v13  ;;  %vm1039_vm8 = vweird.f32 %v1463_v17 }
 0x412   : > { %vm1040_vm11 = vmor %vm1038_vm10, %vm1039_vm8 }
 0x413   : > { %v956_v21 = vmul.f32 %v1461_v14, %v955_v18  ;;  %v1035_v23 = vsub.f32 1.0, %v1034_v19 }
 0x415   : > { %v957_v24 = vadd.f32 %v1461_v14, %v956_v21  ;;  %v1036_v25 = vmul.f32 %v1463_v17, %v1035_v23 }
 0x417   : > { %v961_v27 = vsel %vm960_vm6, %v1461_v14, %v957_v24  ;;  %v1037_v28 = vadd.f32 %v1463_v17, %v1036_v25 }
 0x418   : > { %v966_v29 = vsel %vm963_vm7, %v965_v26, %v961_v27 }
 0x419   : > { %v967_v32 = vmul.f32 %v2097_v47, %v966_v29  ;;  %v1041_v33 = vsel %vm1040_vm11, %v1463_v17, %v1037_v28 }
 0x41a   : > { %v1046_v35 = vsel %vm1043_vm12, %v1045_v34, %v1041_v33 }
 0x41b   : > { %1318 = vmatmul.msk.f32.vlgmr.msra.gmra.mxu3 %vm756_vm9, %v967_v32  ;;  %v1047_v37 = vmul.f32 %v2101_v49, %v1046_v35 }
 0x421   : > { %v1049_v36 = vpop.permute.xlu1 %1048 }
 0x422   : > { %1069 = vmatpush.msra.mxu1 %v1049_v36 }
 0x423   : > { %1321 = vmatmul.msk.f32.vlgmr.msra.gmra.mxu1 %vm756_vm9, %v1047_v37 }
 0x428   : > { %v830_v39 = vpop.f32.mrf.mxu3 }
 0x479   : > { %v911_v38 = vpop.f32.mrf.mxu1 }
 0x47a   : > { %1075 = vrot.lane.b32.xlu0 %v911_v38, %s1765_s24 }
 0x49e   : > { %v991_v40 = vpop.f32.mrf.mxu3 }
 0x49f   : > { %1079 = vrot.lane.b32.xlu2 %v991_v40, %s1766_s20 }
 0x4a0   : > { %v1071_v41 = vpop.f32.mrf.mxu1 }
 0x4a1   : > { %1083 = vrot.lane.b32.xlu0 %v1071_v41, %s1767_s19 }
 0x4ec   : > { %v1076_v46 = vpop.permute.xlu0 %1075 }
 0x4ed   : > { %v1086_v48 = vsel %vm756_vm9, %v830_v39, %v1076_v46 }
 0x4f9   : > { %v1080_v47 = vpop.permute.xlu2 %1079 }
 0x4fa   : > { %v1088_v49 = vsel %vm1087_vm13, %v1086_v48, %v1080_v47 }
 0x513   : > { %v1084_v50 = vpop.permute.xlu0 %1083 }
 0x514   : > { %v1090_v51 = vsel %vm1089_vm14, %v1088_v49, %v1084_v50 }
 0x515   : > { %1322 = vmatmul.msk.f32.vlgmr.msra.gmra.mxu2 %vm603_vm0, %v1090_v51 }
 0x598   : > { %v1114_v53 = vpop.f32.mrf.mxu2 }
 0x599   : > { %v1115_v54 = vadd.f32 %v1439_v52, %v1114_v53 }
 0x59b   : > { %v1117_v55 = vadd.f32 %v1115_v54, %v2037_v0 }
 0x59d   : > { %1118 = vst.msk [vmem:[%s598_s1] sm:$0xff] %vm603_vm0, %v1117_v55 }
 0x59e   : > { %1701 = shalt.err (!%p1698_p11)
}
 0x59f   : > { %1349 = dma.vmem_to_hbm [thread:$0]  (%p1917_p4), %s1133_s11, 128, %s1135_s25, %s1120_s15  }
 0x5a0 PF: > { %s2218_s29 = sld [smem:[#allocation20_spill]] }
 0x5a1   : > { %s2220_s16 = sld [smem:[#allocation21_spill]] }
 0x5a6   : > { %s1146_s30 = sand.u32 1, %s2218_s29  }
 0x5a7   : > { %p2221_p13 = scmp.ge.s32.totalorder %s2220_s16, 2  ;;  %s1147_s21 = scalar_lea.sflag [#allocation4], %s1146_s30 }
 0x5a9   : > { %p1375_p3 = pnand %p2221_p13, %p1921_p5 }
 0x5ab   : > { %p1376_p7 = pneg %p1375_p3 }
 0x5ad   : > { %1735 = dma.done.wait (%p1376_p7), %s1147_s21, 128  }
 0x5ae   : > { %1737 = vsyncadd (%p1376_p7), %s1147_s21, 4294967168  ;;  %s2222_s28 = sld [smem:[#allocation22_spill]]  ;;  %s2224_s25 = smov %s1744_s26 }
 0x5af   : > { %s2223_s18 = sld [smem:[#allocation23_spill]]  ;;  %s2225_s26 = smov %s1748_s27 }
 0x5b4   : > { %p31_p9 = scmp.ge.s32.totalorder %s2222_s28, 4  }
 0x5b5   : > { %s2226_s27 = smov %s2223_s18 }
 0x5b6   :  { %33 = sbr.rel (!%p31_p9) target bundleno = 17 (0x11), region = 157 }
 0x5bb   :  { %1153 = vsyncpa [#allocation3], 1 }
 0x5bc   :  { %1155 = vsyncpa [#allocation3 + $0x1], 1 }
 0x5bd   :  { %1156 = vsyncpa [#allocation6], 1 }
 0x5be   :  { %1158 = vsyncpa [#allocation6 + $0x1], 1 }
 0x5bf   :  { %1159 = vsyncpa [#allocation9], 1 }
 0x5c0   :  { %1160 = vsyncpa [#allocation12], 1 }
 0x5c1   :  { %1161 = vsyncpa [#allocation4], 1 }
 0x5c2   :  { %1163 = vsyncpa [#allocation4 + $0x1], 1 }

</bundles_post_ra>
